<compile_context>
chip_gen: v7x
topology: tpu7x:2x2x1
jax: 0.10.0
libtpu: 0.0.40
codegen_flags: <defaults>
</compile_context>

<pallas_src>
import functools

import jax
import jax.numpy as jnp
import numpy as np
from jax.experimental import pallas as pl
from jax.experimental.pallas import tpu as pltpu


def _round_up(x, m):
    return ((x + m - 1) // m) * m


# ------------------------------------------------------------------ kernel ---
def _centroid_attn_kernel(feat_ref, wqk_ref, vp_ref, bp_ref, out_ref):
    """Per batch tile: scores -> softmax -> fused (value+proj) matmul (+bias)."""
    feat = feat_ref[...]                                                    # (TM, F)

    # scores against pre-folded (Wq @ k^T * scale), shape (F, C)
    s = jnp.dot(feat, wqk_ref[...], preferred_element_type=jnp.float32)     # (TM, C)

    # numerically-stable softmax along the class axis
    s = s - jnp.max(s, axis=-1, keepdims=True)
    p = jnp.exp(s)
    p = p * pl.reciprocal(jnp.sum(p, axis=-1, keepdims=True), approx=True)

    # fused (V @ W_proj) matmul + bias -> feature_dim
    proj = jnp.dot(p.astype(vp_ref.dtype), vp_ref[...],
                   preferred_element_type=jnp.float32) + bp_ref[...]        # (TM, F)

    # lane-dense full-ref store; concat with `features` is done in the wrapper
    out_ref[...] = proj.astype(out_ref.dtype)


# ---------------------------------------------------------------- wrapper ----
def centroid_attention_pallas(features, centers, wq, wk, wv, wp, bp, *, tm=512):
    N, F = features.shape
    C, _ = centers.shape
    A = wq.shape[1]
    scale = float(A) ** (-0.5)

    # ---- hoisted, batch-invariant folds (computed once in the wrapper) ------
    k = jnp.dot(centers, wk)                      # (C, A)
    wqk = jnp.dot(wq, k.T) * scale                # (F, C)  scale folded in
    v = jnp.dot(centers, wv)                      # (C, A)
    if wp is None:                                # feature_dim == attention_dim path
        vp = v                                    # proj == Identity
        bias = jnp.zeros((1, F), features.dtype)
    else:
        vp = jnp.dot(v, wp)                       # (C, F)  value + proj fused
        bias = bp

    # ---- batch tiling: clamp tm for tiny N, pad N so every tile is full -----
    tm = int(max(8, min(tm, _round_up(N, 8))))
    n_pad = _round_up(N, tm)
    feats_p = features if n_pad == N else jnp.pad(
        features, ((0, n_pad - N), (0, 0)))
    grid = (n_pad // tm,)

    # ---- explicit VMEM budget (double-buffered tiles + resident blocks) -----
    itemsize = jnp.dtype(features.dtype).itemsize
    est = 2 * 2 * tm * F * itemsize                      # feat + out tiles, x2 bufs
    est += 2 * tm * C * itemsize                         # score intermediates
    est += 2 * (F * C + C * F + F) * itemsize            # resident wqk, vp, bias
    vmem_limit = int(min(48 * 2**20, max(16 * 2**20, 2 * est)))

    proj = pl.pallas_call(
        _centroid_attn_kernel,
        out_shape=jax.ShapeDtypeStruct((n_pad, F), features.dtype),
        grid_spec=pltpu.PrefetchScalarGridSpec(
            num_scalar_prefetch=0,
            grid=grid,
            in_specs=[
                pl.BlockSpec((tm, F), lambda i: (i, 0)),   # features tile
                pl.BlockSpec((F, C), lambda i: (0, 0)),    # Wq @ k^T * scale (resident)
                pl.BlockSpec((C, F), lambda i: (0, 0)),    # (centers Wv) Wp  (resident)
                pl.BlockSpec((1, F), lambda i: (0, 0)),    # b_proj           (resident)
            ],
            out_specs=pl.BlockSpec((tm, F), lambda i: (i, 0)),
        ),
        compiler_params=pltpu.CompilerParams(
            dimension_semantics=("parallel",),
            vmem_limit_bytes=vmem_limit),
    )(feats_p, wqk, vp, bias)

    proj = proj[:N]
    # output = concat([features, attention_values], axis=-1)
    return jnp.concatenate([features, proj], axis=-1)


# ---------------------------------------------------- centroid update (glue) -
def update_center(features, labels, center_values, center_counts, centers,
                  num_classes):
    """Faithful to CentroidAttention.update_center (labels is not None path)."""
    if labels is None:
        return (centers,
                jnp.zeros_like(center_values),
                jnp.zeros_like(center_counts))
    class_sum = jax.ops.segment_sum(features, labels, num_segments=num_classes)
    class_cnt = jax.ops.segment_sum(jnp.ones((features.shape[0],),
                                             dtype=features.dtype),
                                    labels, num_segments=num_classes)
    new_values = center_values + class_sum
    new_counts = center_counts + class_cnt[:, None]
    present = (class_cnt > 0)[:, None]
    safe_counts = jnp.where(new_counts > 0, new_counts, 1.0)
    new_centers = jnp.where(present, new_values / safe_counts, centers)
    return new_centers, new_values, new_counts


# ------------------------------------------------------------------- main ----
if __name__ == "__main__":
    # small, forward-consistent shapes
    N = 16                # batch of feature vectors
    NUM_CLASSES = 8
    FEATURE_DIM = 32
    ATTENTION_DIM = 16    # != FEATURE_DIM, so the proj Linear is exercised

    key = jax.random.PRNGKey(0)
    kf, kl, kq, kk, kv, kp, kb = jax.random.split(key, 7)

    features = jax.random.normal(kf, (N, FEATURE_DIM), dtype=jnp.float32)
    labels = jax.random.randint(kl, (N,), 0, NUM_CLASSES)

    # deterministic parameter init (qkv_bias=False; proj has bias)
    wq = jax.random.normal(kq, (FEATURE_DIM, ATTENTION_DIM), jnp.float32) * 0.1
    wk = jax.random.normal(kk, (FEATURE_DIM, ATTENTION_DIM), jnp.float32) * 0.1
    wv = jax.random.normal(kv, (FEATURE_DIM, ATTENTION_DIM), jnp.float32) * 0.1
    wp = jax.random.normal(kp, (ATTENTION_DIM, FEATURE_DIM), jnp.float32) * 0.1
    bp = (jax.random.normal(kb, (1, FEATURE_DIM), jnp.float32) * 0.01)

    # registered buffers start at zero
    centers0 = jnp.zeros((NUM_CLASSES, FEATURE_DIM), jnp.float32)
    center_values0 = jnp.zeros((NUM_CLASSES, FEATURE_DIM), jnp.float32)
    center_counts0 = jnp.zeros((NUM_CLASSES, 1), jnp.float32)

    # forward: update centroids (glue), then attention hot path (Pallas kernel)
    centers, _, _ = update_center(features, labels, center_values0,
                                  center_counts0, centers0, NUM_CLASSES)

    out = centroid_attention_pallas(features, centers, wq, wk, wv, wp, bp)
    out = jax.block_until_ready(out)

    # pure-JAX reference of the forward pass for correctness check
    scale = ATTENTION_DIM ** (-0.5)
    q = features @ wq
    k = centers @ wk
    v = centers @ wv
    scores = jax.nn.softmax((q @ k.T) * scale, axis=-1)
    attn = scores @ v
    proj = attn @ wp + bp
    ref = jnp.concatenate([features, proj], axis=-1)

    # tolerance loosened slightly for the approx (EUP) reciprocal in softmax
    np.testing.assert_allclose(np.asarray(out), np.asarray(ref),
                               rtol=2e-3, atol=2e-3)
    print("KERNEL_OK")
</pallas_src>

<mosaic_0001>
module attributes {stable_mosaic.version = 11 : i64} {
  func.func @_centroid_attn_kernel(%arg0: i32, %arg1: memref<16x32xf32, #tpu.memory_space<vmem>>, %arg2: memref<32x8xf32, #tpu.memory_space<vmem>>, %arg3: memref<8x32xf32, #tpu.memory_space<vmem>>, %arg4: memref<1x32xf32, #tpu.memory_space<vmem>>, %arg5: memref<16x32xf32, #tpu.memory_space<vmem>>) attributes {dimension_semantics = [#tpu.dimension_semantics<parallel>], iteration_bounds = array<i64: 1>, scalar_prefetch = 0 : i64, scratch_operands = 0 : i64, tpu.core_type = #tpu.core_type<tc>, window_params = [{transform_indices = @transform_0, window_bounds = array<i64: 16, 32>}, {pipeline_mode = #tpu.pipeline_mode<synchronous>, transform_indices = @transform_1, window_bounds = array<i64: 32, 8>}, {pipeline_mode = #tpu.pipeline_mode<synchronous>, transform_indices = @transform_2, window_bounds = array<i64: 8, 32>}, {pipeline_mode = #tpu.pipeline_mode<synchronous>, transform_indices = @transform_3, window_bounds = array<i64: 1, 32>}, {transform_indices = @transform_4, window_bounds = array<i64: 16, 32>}]} {
    %c0 = arith.constant 0 : index
    %c0_0 = arith.constant 0 : index
    %0 = vector.load %arg1[%c0, %c0_0] : memref<16x32xf32, #tpu.memory_space<vmem>>, vector<16x32xf32>
    %c0_1 = arith.constant 0 : index
    %c0_2 = arith.constant 0 : index
    %1 = vector.load %arg2[%c0_1, %c0_2] : memref<32x8xf32, #tpu.memory_space<vmem>>, vector<32x8xf32>
    %cst = arith.constant dense<0.000000e+00> : vector<16x8xf32>
    %2 = tpu.matmul %0, %1, %cst {dimension_numbers = #tpu.dot_dimension_numbers<[1], [0], [0], [1], [0, 0, 1, 1], [], []>} : vector<16x32xf32>, vector<32x8xf32>, vector<16x8xf32> -> vector<16x8xf32>
    %cst_3 = arith.constant dense<0xFF800000> : vector<16xf32>
    %3 = vector.multi_reduction <maximumf>, %2, %cst_3 [1] : vector<16x8xf32> to vector<16xf32>
    %4 = vector.shape_cast %3 : vector<16xf32> to vector<16x1xf32>
    %5 = vector.broadcast %4 : vector<16x1xf32> to vector<16x8xf32>
    %6 = arith.subf %2, %5 : vector<16x8xf32>
    %7 = math.exp %6 : vector<16x8xf32>
    %cst_4 = arith.constant dense<0.000000e+00> : vector<16xf32>
    %8 = vector.multi_reduction <add>, %7, %cst_4 [1] : vector<16x8xf32> to vector<16xf32>
    %9 = vector.shape_cast %8 : vector<16xf32> to vector<16x1xf32>
    %10 = tpu.reciprocal %9 {approx = true} : vector<16x1xf32> -> vector<16x1xf32>
    %11 = vector.broadcast %10 : vector<16x1xf32> to vector<16x8xf32>
    %12 = arith.mulf %7, %11 : vector<16x8xf32>
    %c0_5 = arith.constant 0 : index
    %c0_6 = arith.constant 0 : index
    %13 = vector.load %arg3[%c0_5, %c0_6] : memref<8x32xf32, #tpu.memory_space<vmem>>, vector<8x32xf32>
    %cst_7 = arith.constant dense<0.000000e+00> : vector<16x32xf32>
    %14 = tpu.matmul %12, %13, %cst_7 {dimension_numbers = #tpu.dot_dimension_numbers<[1], [0], [0], [1], [0, 0, 1, 1], [], []>} : vector<16x8xf32>, vector<8x32xf32>, vector<16x32xf32> -> vector<16x32xf32>
    %c0_8 = arith.constant 0 : index
    %c0_9 = arith.constant 0 : index
    %15 = vector.load %arg4[%c0_8, %c0_9] : memref<1x32xf32, #tpu.memory_space<vmem>>, vector<1x32xf32>
    %16 = vector.broadcast %15 : vector<1x32xf32> to vector<16x32xf32>
    %17 = arith.addf %14, %16 : vector<16x32xf32>
    %c0_10 = arith.constant 0 : index
    %c0_11 = arith.constant 0 : index
    %18 = vector.load %arg5[%c0_10, %c0_11] : memref<16x32xf32, #tpu.memory_space<vmem>>, vector<16x32xf32>
    tpu.vector_store %arg5[%c0_10, %c0_11], %17 {strides = array<i32>} : memref<16x32xf32, #tpu.memory_space<vmem>>, vector<16x32xf32>,
    return
  }
  func.func @transform_0(%arg0: i32) -> (i32, i32) {
    %c0_i32 = arith.constant 0 : i32
    %c0_i32_0 = arith.constant 0 : i32
    return %arg0, %c0_i32 : i32, i32
  }
  func.func @transform_1(%arg0: i32) -> (i32, i32) {
    %c0_i32 = arith.constant 0 : i32
    %c0_i32_0 = arith.constant 0 : i32
    %c0_i32_1 = arith.constant 0 : i32
    return %c0_i32, %c0_i32_0 : i32, i32
  }
  func.func @transform_2(%arg0: i32) -> (i32, i32) {
    %c0_i32 = arith.constant 0 : i32
    %c0_i32_0 = arith.constant 0 : i32
    %c0_i32_1 = arith.constant 0 : i32
    return %c0_i32, %c0_i32_0 : i32, i32
  }
  func.func @transform_3(%arg0: i32) -> (i32, i32) {
    %c0_i32 = arith.constant 0 : i32
    %c0_i32_0 = arith.constant 0 : i32
    %c0_i32_1 = arith.constant 0 : i32
    return %c0_i32, %c0_i32_0 : i32, i32
  }
  func.func @transform_4(%arg0: i32) -> (i32, i32) {
    %c0_i32 = arith.constant 0 : i32
    %c0_i32_0 = arith.constant 0 : i32
    return %arg0, %c0_i32 : i32, i32
  }
}

</mosaic_0001>

<bundles_post_ra>
// kernel: tpu_custom_call.1
= control target key start
LH: loop header
LB: loop body
LE: loop exit
PB: predicated region body
PF: predicated region fallthrough
CT: control target
= control target key end

     0   :  { %vm24_vm0 = vcmask 261120   ;;  %s383_s0 = inlined_call_operand.vmem [shape: f32[16,32], index: 0, kind: input, shape index: {}]   ;;  %s384_s1 = inlined_call_operand.vmem [shape: f32[32,8], index: 1, kind: input, shape index: {}]   ;;  %s385_s2 = inlined_call_operand.vmem [shape: f32[8,32], index: 2, kind: input, shape index: {}]   ;;  %s386_s3 = inlined_call_operand.vmem [shape: f32[1,32], index: 3, kind: input, shape index: {}]   ;;  %s387_s4 = inlined_call_operand.hbm [shape: f32[16,32], index: 4, kind: output, shape index: {}]  }
   0x1   :  { %v20_v0 = vld [vmem:[%s384_s1] sm:$0xff]  ;;  %v21_v1 = vld [vmem:[%s384_s1 + $0x8] sm:$0xff]  ;;  %v22_v2 = vld [vmem:[%s384_s1 + $0x10] sm:$0xff] }
   0x2   :  { %v266_v3 = vpack.c.bf16 %v21_v1, %v20_v0  ;;  %v23_v4 = vld [vmem:[%s384_s1 + $0x18] sm:$0xff]  ;;  %v18_v5 = vld [vmem:[%s383_s0] sm:$0xff] }
   0x3   :  { %v270_v6 = vpack.c.bf16 %v23_v4, %v22_v2  ;;  %258 = vmatprep.mubr.msk.f32.mxu0 %vm24_vm0, %v18_v5 }
   0x4   :  { %9 = vsyncpa [#allocation3], 0  ;;  %267 = vmatprep.subr.bf16.mxu0 %v266_v3  ;;  %v19_v7 = vld [vmem:[%s383_s0 + $0x8] sm:$0xff]  ;;  %vm106_vm1 = vcmask 64512   ;;  %v129_v22 = vld [vmem:[%s385_s2] sm:$0xff]  ;;  %s309_s29 = smov [#allocation2]  }
   0x5   :  { %269 = vmatpush3.bf16.msra.mxu0 %v266_v3  ;;  %261 = vmatprep.subr.mxu1 %v129_v22  ;;  %v238_v29 = vld [vmem:[%s386_s3] ss:$0 sm:$0xff]  ;;  %s225_s2 = sshll.u32 %s309_s29, 4  ;;  %s226_s2 = int_to_ptr.vmem [resolvable:$true] %s225_s2 }
   0x6   :  { %271 = vmatprep.subr.bf16.mxu0 %v270_v6  ;;  %262 = vmatpush3.msra.mxu1 %v129_v22  ;;  %s285_s30 = scalar_lea.vmem %s226_s2, 256  ;;  %p290_p1 = scmp.lt.s32.totalorder %s226_s2, %s226_s2 }
   0x7   :  { %p286_p0 = scmp.ne.s32.totalorder %s226_s2, %s285_s30  ;;  %p291_p2 = scmp.lt.s32.totalorder %s285_s30, %s285_s30 }
   0x9   :  { %273 = vmatpush3.bf16.msra.mxu0 %v270_v6  ;;  %p292_p3 = por %p291_p2, %p290_p1 }
   0xb   :  { %p293_p4 = pnand %p292_p3, %p286_p0 }
   0xc   :  { %259 = vmatmul.mubr.msk.f32.vlgmr.msra.gmra.mrb[0].mxu0 %vm24_vm0, %v19_v7 }
  0xdf   :  { %v260_v8 = vpop.f32.mrb[0].mxu0 }
  0xe0   :  { %v97_v9 = vpop.f32.mrb[1].mxu0  ;;  %v110_v11 = vsel %vm106_vm1, %v260_v8, -inf }
  0xe1   :  { %v107_v10 = vsel %vm106_vm1, %v97_v9, -inf }
  0xe2   :  { %108 = vmax.xlane.f32.xlu0 %v107_v10 }
  0xe6   :  { %111 = vmax.xlane.f32.xlu0 %v110_v11 }
 0x16f   :  { %v109_v12 = vpop.xlane.xlu0 %108 }
 0x170   :  { %v113_v13 = vsub.f32 %v97_v9, %v109_v12 }
 0x172   :  { %v115_v14 = vmul.f32 1.442695, %v113_v13 }
 0x173   :  { %v112_v15 = vpop.xlane.xlu0 %111 }
 0x174   :  { %277 = vpow2.f32 %v115_v14  ;;  %v114_v16 = vsub.f32 %v260_v8, %v112_v15 }
 0x176   :  { %v117_v17 = vmul.f32 1.442695, %v114_v16 }
 0x178   :  { %279 = vpow2.f32 %v117_v17 }
 0x17e   :  { %v278_v18 = vpop.eup %277 }
 0x17f   :  { %v119_v19 = vsel %vm106_vm1, %v278_v18, 0.0 }
 0x180   :  { %120 = vadd.xlane.f32.xlu1 %v119_v19 }
 0x182   :  { %v280_v20 = vpop.eup %279 }
 0x183   :  { %v122_v21 = vsel %vm106_vm1, %v280_v20, 0.0 }
 0x184   :  { %123 = vadd.xlane.f32.xlu1 %v122_v21 }
 0x20d   :  { %v121_v23 = vpop.xlane.xlu1 %120 }
 0x20e   :  { %281 = vrcp.f32 %v121_v23 }
 0x211   :  { %v124_v24 = vpop.xlane.xlu1 %123 }
 0x212   :  { %283 = vrcp.f32 %v124_v24 }
 0x218   :  { %v282_v25 = vpop.eup %281 }
 0x219   :  { %v127_v26 = vmul.f32 %v282_v25, %v278_v18 }
 0x21b   :  { %263 = vmatprep.mubr.msk.f32.mxu1 %vm106_vm1, %v127_v26 }
 0x21c   :  { %v284_v27 = vpop.eup %283 }
 0x21d   :  { %v128_v28 = vmul.f32 %v284_v27, %v280_v20 }
 0x21f   :  { %264 = vmatmul.mubr.msk.f32.vlgmr.msra.gmra.mrb[0].mxu1 %vm106_vm1, %v128_v28 }
 0x2f2   :  { %v265_v30 = vpop.f32.mrb[0].mxu1 }
 0x2f3   :  { %v215_v31 = vadd.f32 %v265_v30, %v238_v29  ;;  %v209_v32 = vpop.f32.mrb[1].mxu1 }
 0x2f4   :  { %v210_v33 = vadd.f32 %v238_v29, %v209_v32 }
 0x2f5   :  { %219 = vst.msk [vmem:[#allocation2 + $0x8] sm:$0xff] %vm24_vm0, %v215_v31 }
 0x2f6   :  { %218 = vst.msk [vmem:[#allocation2] sm:$0xff] %vm24_vm0, %v210_v33 }
 0x2f7   :  { %296 = shalt.err (!%p293_p4)
}
 0x2f8   :  { %s297_s6 = scalar_lea.hbm %s387_s4, 256 }
 0x2f9   :  { %p298_p5 = scmp.ne.s32.totalorder %s387_s4, %s297_s6  ;;  %p301_p6 = scmp.lt.u32.totalorder %s297_s6, %s387_s4 }
 0x2fb   :  { %p303_p7 = pnand %p301_p6, %p298_p5 }
 0x2fd   :  { %306 = shalt.err (!%p303_p7)
}
 0x2fe   :  { %s310_s11 = smov 128   ;;  %s311_s12 = smov 8  }
 0x2ff   :  { %231 = dma.vmem_to_hbm [thread:$0]  %s226_s2, 256, %s387_s4, [#allocation3], %s310_s11, %s310_s11, %s311_s12  }
 0x300   :  { %307 = dma.done.wait [#allocation3], 256  }
 0x301   :  { %308 = vsyncadd [#allocation3], 4294967040 }
 0x302   :  { %235 = vsyncpa [#allocation3], 1 }

</bundles_post_ra>
